<compile_context>
chip_gen: v5e
topology: v5e:2x2
jax: 0.10.0
libtpu: 0.0.40
codegen_flags: <defaults>
</compile_context>

<pallas_src>
import jax
import jax.numpy as jnp
from jax.experimental import pallas as pl
from jax.experimental.pallas import tpu as pltpu

_LANES = 128
_MAX_TILE_ROWS = 1024          # (1024, 128) f32 = 512 KiB per buffer
_PALLAS_MIN_ELEMENTS = 8192    # below this, plain fused XLA is strictly faster


def _affine_kernel(w_ref, b_ref, x_ref, o_ref):
    # Linear(1,1): out = x @ W^T + b == x * w + b (scalar w, b from SMEM).
    w = w_ref[0]
    b = b_ref[0]
    o_ref[...] = x_ref[...] * w + b


def linear_1x1(x: jax.Array, weight: jax.Array, bias: jax.Array) -> jax.Array:
    """y = x @ weight.T + bias with weight: (1,1), bias: (1,); x: (..., 1)."""
    orig_shape = x.shape
    assert orig_shape[-1] == 1, "Linear(1,1) expects trailing dim of size 1"
    dtype = x.dtype
    w = weight.reshape(()).astype(dtype)
    b = bias.reshape(()).astype(dtype)

    n = x.size
    if n < _PALLAS_MIN_ELEMENTS:
        # Kernel-launch + per-step overhead dwarfs the FLOPs at this size.
        return x * w + b

    # Lane-dense repack: flatten, pad to a whole number of (tile_rows, 128)
    # blocks, reshape to 2-D with the fast (lane) axis = 128.
    flat = x.reshape(-1)
    rows = -(-n // _LANES)                              # ceil(n / 128)
    tile_rows = min(_MAX_TILE_ROWS, ((rows + 7) // 8) * 8)  # multiple of 8
    rows_pad = -(-rows // tile_rows) * tile_rows
    n_pad = rows_pad * _LANES
    if n_pad != n:
        flat = jnp.pad(flat, (0, n_pad - n))
    x2d = flat.reshape(rows_pad, _LANES)

    w_smem = w.reshape(1)
    b_smem = b.reshape(1)

    out = pl.pallas_call(
        _affine_kernel,
        out_shape=jax.ShapeDtypeStruct((rows_pad, _LANES), dtype),
        grid=(rows_pad // tile_rows,),
        in_specs=[
            pl.BlockSpec(memory_space=pltpu.MemorySpace.SMEM),  # weight scalar
            pl.BlockSpec(memory_space=pltpu.MemorySpace.SMEM),  # bias scalar
            pl.BlockSpec((tile_rows, _LANES), lambda i: (i, 0)),  # x tile
        ],
        out_specs=pl.BlockSpec((tile_rows, _LANES), lambda i: (i, 0)),
        compiler_params=pltpu.CompilerParams(
            dimension_semantics=("parallel",)),
    )(w_smem, b_smem, x2d)

    # Drop padding and restore the original shape.
    return out.reshape(-1)[:n].reshape(orig_shape)


if __name__ == "__main__":
    key = jax.random.PRNGKey(0)
    k_x, k_w, k_b, k_x2 = jax.random.split(key, 4)

    # Parameter shapes from torch.nn.Linear(1, 1): weight (1,1), bias (1,).
    weight = jax.random.uniform(k_w, (1, 1), jnp.float32, minval=-1.0, maxval=1.0)
    bias = jax.random.uniform(k_b, (1,), jnp.float32, minval=-1.0, maxval=1.0)

    # Tiny input consistent with the forward (trailing feature dim = 1):
    # takes the fast XLA bypass path.
    x_small = jax.random.normal(k_x, (2, 8, 1), jnp.float32)
    y_small = jax.block_until_ready(linear_1x1(x_small, weight, bias))
    ref_small = x_small @ weight.T + bias
    assert y_small.shape == x_small.shape
    assert jnp.allclose(y_small, ref_small, atol=1e-6, rtol=1e-6)

    # Larger input: exercises the lane-dense, row-tiled Pallas path.
    x_big = jax.random.normal(k_x2, (16, 1024, 1), jnp.float32)
    y_big = jax.block_until_ready(linear_1x1(x_big, weight, bias))
    ref_big = x_big @ weight.T + bias
    assert y_big.shape == x_big.shape
    assert jnp.allclose(y_big, ref_big, atol=1e-6, rtol=1e-6)

    print("KERNEL_OK")
</pallas_src>

<mosaic_0001>
module attributes {stable_mosaic.version = 11 : i64} {
  func.func @_affine_kernel(%arg0: i32, %arg1: memref<1xf32, #tpu.memory_space<smem>>, %arg2: memref<1xf32, #tpu.memory_space<smem>>, %arg3: memref<128x128xf32, #tpu.memory_space<vmem>>, %arg4: memref<128x128xf32, #tpu.memory_space<vmem>>) attributes {dimension_semantics = [#tpu.dimension_semantics<parallel>], iteration_bounds = array<i64: 1>, scalar_prefetch = 0 : i64, scratch_operands = 0 : i64, tpu.core_type = #tpu.core_type<tc>, window_params = [{transform_indices = @transform_0, window_bounds = array<i64: 1>}, {transform_indices = @transform_1, window_bounds = array<i64: 1>}, {transform_indices = @transform_2, window_bounds = array<i64: 128, 128>}, {transform_indices = @transform_3, window_bounds = array<i64: 128, 128>}]} {
    %c0 = arith.constant 0 : index
    %0 = memref.load %arg1[%c0] : memref<1xf32, #tpu.memory_space<smem>>
    %c0_0 = arith.constant 0 : index
    %1 = memref.load %arg2[%c0_0] : memref<1xf32, #tpu.memory_space<smem>>
    %c0_1 = arith.constant 0 : index
    %c0_2 = arith.constant 0 : index
    %2 = vector.load %arg3[%c0_1, %c0_2] : memref<128x128xf32, #tpu.memory_space<vmem>>, vector<128x128xf32>
    %3 = vector.broadcast %0 : f32 to vector<128x128xf32>
    %4 = arith.mulf %2, %3 : vector<128x128xf32>
    %5 = vector.broadcast %1 : f32 to vector<128x128xf32>
    %6 = arith.addf %4, %5 : vector<128x128xf32>
    %c0_3 = arith.constant 0 : index
    %c0_4 = arith.constant 0 : index
    %7 = vector.load %arg4[%c0_3, %c0_4] : memref<128x128xf32, #tpu.memory_space<vmem>>, vector<128x128xf32>
    tpu.vector_store %arg4[%c0_3, %c0_4], %6 {strides = array<i32>} : memref<128x128xf32, #tpu.memory_space<vmem>>, vector<128x128xf32>,
    return
  }
  func.func @transform_0(%arg0: i32) -> i32 {
    %c0_i32 = arith.constant 0 : i32
    %c0_i32_0 = arith.constant 0 : i32
    return %c0_i32 : i32
  }
  func.func @transform_1(%arg0: i32) -> i32 {
    %c0_i32 = arith.constant 0 : i32
    %c0_i32_0 = arith.constant 0 : i32
    return %c0_i32 : i32
  }
  func.func @transform_2(%arg0: i32) -> (i32, i32) {
    %c0_i32 = arith.constant 0 : i32
    %c0_i32_0 = arith.constant 0 : i32
    return %arg0, %c0_i32 : i32, i32
  }
  func.func @transform_3(%arg0: i32) -> (i32, i32) {
    %c0_i32 = arith.constant 0 : i32
    %c0_i32_0 = arith.constant 0 : i32
    return %arg0, %c0_i32 : i32, i32
  }
}

</mosaic_0001>

<bundles_post_ra>
// kernel: tpu_custom_call.1
= control target key start
LH: loop header
LB: loop body
LE: loop exit
PB: predicated region body
PF: predicated region fallthrough
CT: control target
= control target key end

     0   :  { %10 = vsyncpa [#allocation5], 0  ;;  %s218_s0 = inlined_call_operand.<no memory space> [shape: f32[1], index: 0, kind: input, shape index: {}]   ;;  %s219_s1 = inlined_call_operand.<no memory space> [shape: f32[1], index: 1, kind: input, shape index: {}]   ;;  %s220_s2 = inlined_call_operand.hbm [shape: f32[128,128], index: 2, kind: input, shape index: {}]   ;;  %s221_s3 = inlined_call_operand.hbm [shape: f32[128,128], index: 3, kind: output, shape index: {}]  }
   0x1   :  { %11 = vsyncpa [#allocation6], 0  ;;  %s20_s14 = sshll.u32 %s220_s2, 4  ;;  %s176_s15 = smov [#allocation4]   ;;  %s21_s14 = int_to_ptr.hbm [resolvable:$true] %s20_s14 }
   0x2   :  { %s22_s16 = sshll.u32 %s176_s15, 4  ;;  %s177_s17 = smov 128   ;;  %s23_s16 = int_to_ptr.vmem [resolvable:$true] %s22_s16 }
   0x3   :  { %s178_s18 = smov 8  }
   0x4   :  { %28 = dma.hbm_to_vmem [thread:$0]  %s21_s14, 2048, %s23_s16, [#allocation5], %s177_s17, %s177_s17, %s178_s18  }
   0x5   :  { %172 = dma.done.wait [#allocation5], 2048  }
   0x6   :  { %173 = vsyncadd [#allocation5], 4294965248  ;;  %v51_v0 = vstv %s218_s0  ;;  %v35_v1 = vld [vmem:[#allocation4] sm:$0xff]  ;;  %v68_v2 = vstv %s219_s1  ;;  %v36_v3 = vld [vmem:[#allocation4 + $0x8] sm:$0xff]  ;;  %s179_s0 = smov [#allocation7]   ;;  %s107_s24 = sshll.u32 %s221_s3, 4  ;;  %s108_s24 = int_to_ptr.hbm [resolvable:$true] %s107_s24 }
   0x7   :  { %v37_v4 = vld [vmem:[#allocation4 + $0x10] sm:$0xff]  ;;  %v52_v5 = vmul.f32 %v51_v0, %v35_v1  ;;  %v53_v6 = vmul.f32 %v51_v0, %v36_v3  ;;  %v38_v8 = vld [vmem:[#allocation4 + $0x18] sm:$0xff]  ;;  %v39_v9 = vld [vmem:[#allocation4 + $0x20] sm:$0xff]  ;;  %s105_s1 = sshll.u32 %s179_s0, 4  ;;  %s106_s1 = int_to_ptr.vmem [resolvable:$true] %s105_s1 }
   0x8   :  { %v54_v7 = vmul.f32 %v51_v0, %v37_v4  ;;  %v40_v10 = vld [vmem:[#allocation4 + $0x28] sm:$0xff]  ;;  %v55_v11 = vmul.f32 %v51_v0, %v38_v8  ;;  %v56_v12 = vmul.f32 %v51_v0, %v39_v9  ;;  %v41_v14 = vld [vmem:[#allocation4 + $0x30] sm:$0xff]  ;;  %v42_v15 = vld [vmem:[#allocation4 + $0x38] sm:$0xff] }
   0x9   :  { %v57_v13 = vmul.f32 %v51_v0, %v40_v10  ;;  %v43_v16 = vld [vmem:[#allocation4 + $0x40] sm:$0xff]  ;;  %v69_v17 = vadd.f32 %v68_v2, %v52_v5  ;;  %v70_v18 = vadd.f32 %v68_v2, %v53_v6  ;;  %v58_v20 = vmul.f32 %v51_v0, %v41_v14  ;;  %v44_v21 = vld [vmem:[#allocation4 + $0x48] sm:$0xff]  ;;  %v45_v24 = vld [vmem:[#allocation4 + $0x50] sm:$0xff] }
   0xa   :  { %v71_v19 = vadd.f32 %v68_v2, %v54_v7  ;;  %v72_v22 = vadd.f32 %v68_v2, %v55_v11  ;;  %v59_v23 = vmul.f32 %v51_v0, %v42_v15  ;;  %v73_v25 = vadd.f32 %v68_v2, %v56_v12  ;;  %v46_v27 = vld [vmem:[#allocation4 + $0x58] sm:$0xff]  ;;  %v47_v30 = vld [vmem:[#allocation4 + $0x60] sm:$0xff]  ;;  %v48_v33 = vld [vmem:[#allocation4 + $0x68] sm:$0xff] }
   0xb   :  { %85 = vst [vmem:[#allocation7] sm:$0xff] %v69_v17  ;;  %v60_v26 = vmul.f32 %v51_v0, %v43_v16  ;;  %v74_v28 = vadd.f32 %v68_v2, %v57_v13  ;;  %v61_v29 = vmul.f32 %v51_v0, %v44_v21  ;;  %v75_v31 = vadd.f32 %v68_v2, %v58_v20  ;;  %v49_v36 = vld [vmem:[#allocation4 + $0x70] sm:$0xff]  ;;  %v50_v39 = vld [vmem:[#allocation4 + $0x78] sm:$0xff] }
   0xc   :  { %86 = vst [vmem:[#allocation7 + $0x8] sm:$0xff] %v70_v18  ;;  %v62_v32 = vmul.f32 %v51_v0, %v45_v24  ;;  %v76_v34 = vadd.f32 %v68_v2, %v59_v23  ;;  %v63_v35 = vmul.f32 %v51_v0, %v46_v27  ;;  %v64_v38 = vmul.f32 %v51_v0, %v47_v30 }
   0xd   :  { %87 = vst [vmem:[#allocation7 + $0x10] sm:$0xff] %v71_v19  ;;  %v77_v37 = vadd.f32 %v68_v2, %v60_v26  ;;  %v78_v40 = vadd.f32 %v68_v2, %v61_v29  ;;  %v65_v41 = vmul.f32 %v51_v0, %v48_v33  ;;  %v66_v43 = vmul.f32 %v51_v0, %v49_v36 }
   0xe   :  { %88 = vst [vmem:[#allocation7 + $0x18] sm:$0xff] %v72_v22  ;;  %v79_v42 = vadd.f32 %v68_v2, %v62_v32  ;;  %v80_v44 = vadd.f32 %v68_v2, %v63_v35  ;;  %v67_v45 = vmul.f32 %v51_v0, %v50_v39  ;;  %v81_v46 = vadd.f32 %v68_v2, %v64_v38 }
   0xf   :  { %89 = vst [vmem:[#allocation7 + $0x20] sm:$0xff] %v73_v25  ;;  %v82_v47 = vadd.f32 %v68_v2, %v65_v41  ;;  %v83_v48 = vadd.f32 %v68_v2, %v66_v43 }
  0x10   :  { %90 = vst [vmem:[#allocation7 + $0x28] sm:$0xff] %v74_v28  ;;  %v84_v49 = vadd.f32 %v68_v2, %v67_v45 }
  0x11   :  { %91 = vst [vmem:[#allocation7 + $0x30] sm:$0xff] %v75_v31 }
  0x12   :  { %92 = vst [vmem:[#allocation7 + $0x38] sm:$0xff] %v76_v34 }
  0x13   :  { %93 = vst [vmem:[#allocation7 + $0x40] sm:$0xff] %v77_v37 }
  0x14   :  { %94 = vst [vmem:[#allocation7 + $0x48] sm:$0xff] %v78_v40 }
  0x15   :  { %95 = vst [vmem:[#allocation7 + $0x50] sm:$0xff] %v79_v42 }
  0x16   :  { %96 = vst [vmem:[#allocation7 + $0x58] sm:$0xff] %v80_v44 }
  0x17   :  { %97 = vst [vmem:[#allocation7 + $0x60] sm:$0xff] %v81_v46 }
  0x18   :  { %98 = vst [vmem:[#allocation7 + $0x68] sm:$0xff] %v82_v47 }
  0x19   :  { %99 = vst [vmem:[#allocation7 + $0x70] sm:$0xff] %v83_v48 }
  0x1a   :  { %100 = vst [vmem:[#allocation7 + $0x78] sm:$0xff] %v84_v49 }
  0x1b   :  { %113 = dma.vmem_to_hbm [thread:$0]  %s106_s1, 2048, %s108_s24, [#allocation6], %s177_s17, %s177_s17, %s178_s18  }
  0x1c   :  { %174 = dma.done.wait [#allocation6], 2048  }
  0x1d   :  { %175 = vsyncadd [#allocation6], 4294965248 }
  0x1e   :  { %118 = vsyncpa [#allocation5], 1 }
  0x1f   :  { %119 = vsyncpa [#allocation6], 1 }

</bundles_post_ra>
